<compile_context>
chip_gen: v5e
topology: v5e:2x2
jax: 0.10.0
libtpu: 0.0.40
codegen_flags: <defaults>
</compile_context>

<pallas_src>
import jax
import jax.numpy as jnp
from jax.experimental import pallas as pl
from jax.experimental.pallas import tpu as pltpu

EPS = 1e-5      # eps used in _process_1
BN_EPS = 1e-5   # nn.BatchNorm2d default eps

TARGET_BLOCK_BYTES = 2 << 20   # ~2 MiB x/out blocks: past the HBM-roofline knee
NB_CAP = 16                    # bounds the static unroll of the gating loop
VMEM_LIMIT_BYTES = 32 << 20    # explicit scoped-VMEM budget (safe on v7x's 64 MiB)


def _cs_attention_kernel(x_ref, wf1a_ref, wf1b_ref, wf2_ref,
                         wg1a_ref, wg1b_ref, wg2_ref,
                         bns_ref, bnb_ref, o_ref):
    x = x_ref[...]                               # (NB, C, HW) f32
    nb, _, hw = x.shape
    inv_hw = 1.0 / hw
    inv_hwm1 = 1.0 / max(hw - 1, 1)              # HW==1 is degenerate for torch.var too

    # ---- one fused sweep over the tile: sum / sum-of-squares / max --------
    s1 = jnp.sum(x, axis=-1)                     # (NB, C)  lane-major (C on lanes)
    s2 = jnp.sum(x * x, axis=-1)                 # (NB, C)
    mx = jnp.max(x, axis=-1)                     # (NB, C)

    mean = s1 * inv_hw
    # Single-pass unbiased variance (matches torch.var's /(n-1)).  Fine for
    # roughly centered activations; see cancellation note in cs_attention().
    var = (s2 - s1 * mean) * inv_hwm1
    std = jnp.sqrt(var + EPS)

    # ---- _process_1: fc([mean; std]) -> BN(eval, folded) -> sigmoid -------
    # First-layer weights are pre-split so no in-kernel concatenation is needed.
    h = jnp.maximum(
        jnp.dot(mean, wf1a_ref[...], preferred_element_type=jnp.float32)
        + jnp.dot(std, wf1b_ref[...], preferred_element_type=jnp.float32),
        0.0)                                                            # (NB, hid)
    t2 = jnp.dot(h, wf2_ref[...], preferred_element_type=jnp.float32)  # (NB, C)
    s = jax.nn.sigmoid(t2 * bns_ref[...] + bnb_ref[...])               # (NB, C)

    # ---- fc_2([max_pool; _process_1]) -> sigmoid ---------------------------
    h2 = jnp.maximum(
        jnp.dot(mx, wg1a_ref[...], preferred_element_type=jnp.float32)
        + jnp.dot(s, wg1b_ref[...], preferred_element_type=jnp.float32),
        0.0)                                                            # (NB, hid)
    attn = jax.nn.sigmoid(
        jnp.dot(h2, wg2_ref[...], preferred_element_type=jnp.float32))  # (NB, C)

    # ---- gating: one small transpose, then lane-broadcast multiplies ------
    attn_t = attn.T                              # (C, NB), sublane-major
    for i in range(nb):                          # static unroll, nb <= NB_CAP
        o_ref[i] = x_ref[i] * attn_t[:, i:i + 1]


def _choose_nb(n, per_elem_bytes):
    nb = int(max(1, min(n, NB_CAP, TARGET_BLOCK_BYTES // max(per_elem_bytes, 1))))
    while n % nb:
        nb -= 1
    # Prefer an even number of grid steps (v7x shards a "parallel" axis across
    # its 2 TensorCores) as long as blocks stay >= ~1 MiB.
    if (n // nb) % 2 == 1 and nb % 2 == 0 and (nb // 2) * per_elem_bytes >= (1 << 20):
        nb //= 2
    return nb


def cs_attention(x_nchw, w1_fc, w2_fc, w1_fc2, w2_fc2, bn_scale, bn_shift):
    """CSAttention forward.

    Weights are the squeezed 1x1-conv kernels:
      w1_fc / w1_fc2: (hid, 2C), w2_fc / w2_fc2: (C, hid);
      bn_scale / bn_shift: (C,) eval-mode BatchNorm folded to scale/shift.
    Note: the in-kernel variance is single-pass (sum of squares); for inputs
    with very large mean relative to spread, switch back to a two-pass
    mean-shifted variance to avoid cancellation.
    """
    N, C, H, W = x_nchw.shape
    HW = H * W
    hid = w1_fc.shape[0]
    x = x_nchw.reshape(N, C, HW)

    per_elem_bytes = C * HW * x.dtype.itemsize
    nb = _choose_nb(N, per_elem_bytes)
    # TODO(synk): for very large C*HW (blocks that no longer fit double-buffered
    # in v7x's 64 MiB VMEM), switch to a two-pass streaming variant (chunked
    # spatial reduction pass, then chunked gating pass re-reading x).

    # Pre-transpose / pre-split the tiny MLP weights so the kernel's matmuls
    # are plain (NB,C)@(C,hid) / (NB,hid)@(hid,C) with no in-kernel concat.
    wf1 = w1_fc.T                        # (2C, hid)
    wf1a, wf1b = wf1[:C], wf1[C:]        # (C, hid) each: [mean-half, std-half]
    wf2 = w2_fc.T                        # (hid, C)
    wg1 = w1_fc2.T
    wg1a, wg1b = wg1[:C], wg1[C:]        # (C, hid) each: [max-half, s-half]
    wg2 = w2_fc2.T
    bns = bn_scale.reshape(1, C)
    bnb = bn_shift.reshape(1, C)

    def full(shape):
        return pl.BlockSpec(shape, lambda b: (0,) * len(shape))

    out = pl.pallas_call(
        _cs_attention_kernel,
        out_shape=jax.ShapeDtypeStruct((N, C, HW), x.dtype),
        grid_spec=pltpu.PrefetchScalarGridSpec(
            num_scalar_prefetch=0,
            grid=(N // nb,),
            in_specs=[
                pl.BlockSpec((nb, C, HW), lambda b: (b, 0, 0)),
                full((C, hid)), full((C, hid)), full((hid, C)),
                full((C, hid)), full((C, hid)), full((hid, C)),
                full((1, C)), full((1, C)),
            ],
            out_specs=pl.BlockSpec((nb, C, HW), lambda b: (b, 0, 0)),
        ),
        compiler_params=pltpu.CompilerParams(
            dimension_semantics=("parallel",),
            vmem_limit_bytes=VMEM_LIMIT_BYTES,
        ),
    )(x, wf1a, wf1b, wf2, wg1a, wg1b, wg2, bns, bnb)
    return out.reshape(N, C, H, W)


def cs_attention_ref(x_nchw, w1_fc, w2_fc, w1_fc2, w2_fc2, bn_scale, bn_shift):
    """Pure-JAX reference mirroring the PyTorch forward (BN in eval mode)."""
    N, C, H, W = x_nchw.shape
    xr = x_nchw.reshape(N, C, H * W)
    mean = xr.mean(axis=-1, keepdims=True)
    var = ((xr - mean) ** 2).sum(axis=-1, keepdims=True) / (H * W - 1)
    std = jnp.sqrt(var + EPS)
    mx = xr.max(axis=-1, keepdims=True)

    t = jnp.concatenate([mean, std], axis=1)                       # (N, 2C, 1)
    h = jnp.maximum(jnp.einsum('hc,ncx->nhx', w1_fc, t), 0.0)
    t2 = jnp.einsum('ch,nhx->ncx', w2_fc, h)
    s = jax.nn.sigmoid(t2 * bn_scale[None, :, None] + bn_shift[None, :, None])

    a = jnp.concatenate([mx, s], axis=1)
    h2 = jnp.maximum(jnp.einsum('hc,ncx->nhx', w1_fc2, a), 0.0)
    attn = jax.nn.sigmoid(jnp.einsum('ch,nhx->ncx', w2_fc2, h2))
    return (xr * attn).reshape(N, C, H, W)


if __name__ == "__main__":
    # Module config: 2*C // 16 >= 1 requires C >= 8; HW kept a 128-multiple
    # so the gating stores stay lane-dense (important on v5e's single vst slot).
    N, C, H, W = 2, 32, 16, 16
    hid = 2 * C // 16   # hard-coded //16 in the PyTorch __init__ (ratio unused)

    key = jax.random.PRNGKey(0)
    kx, k1, k2, k3, k4 = jax.random.split(key, 5)
    x = jax.random.normal(kx, (N, C, H, W), dtype=jnp.float32)

    # Deterministic synthetic weights (1x1 conv kernels squeezed to 2-D).
    w1_fc = jax.random.normal(k1, (hid, 2 * C), dtype=jnp.float32) * 0.1
    w2_fc = jax.random.normal(k2, (C, hid), dtype=jnp.float32) * 0.1
    w1_fc2 = jax.random.normal(k3, (hid, 2 * C), dtype=jnp.float32) * 0.1
    w2_fc2 = jax.random.normal(k4, (C, hid), dtype=jnp.float32) * 0.1

    # BatchNorm2d eval-mode params (PyTorch defaults), folded to scale/shift.
    gamma = jnp.ones((C,), jnp.float32)
    beta = jnp.zeros((C,), jnp.float32)
    running_mean = jnp.zeros((C,), jnp.float32)
    running_var = jnp.ones((C,), jnp.float32)
    bn_scale = gamma / jnp.sqrt(running_var + BN_EPS)
    bn_shift = beta - running_mean * bn_scale

    run = jax.jit(cs_attention)
    out = run(x, w1_fc, w2_fc, w1_fc2, w2_fc2, bn_scale, bn_shift)
    out = jax.block_until_ready(out)

    ref = cs_attention_ref(x, w1_fc, w2_fc, w1_fc2, w2_fc2, bn_scale, bn_shift)
    assert out.shape == (N, C, H, W)
    assert jnp.allclose(out, ref, atol=1e-4, rtol=1e-4), "mismatch vs reference"

    print("KERNEL_OK")
</pallas_src>

<mosaic_0001>
module attributes {stable_mosaic.version = 11 : i64} {
  func.func @_cs_attention_kernel(%arg0: i32, %arg1: memref<2x32x256xf32, #tpu.memory_space<vmem>>, %arg2: memref<32x4xf32, #tpu.memory_space<vmem>>, %arg3: memref<32x4xf32, #tpu.memory_space<vmem>>, %arg4: memref<4x32xf32, #tpu.memory_space<vmem>>, %arg5: memref<32x4xf32, #tpu.memory_space<vmem>>, %arg6: memref<32x4xf32, #tpu.memory_space<vmem>>, %arg7: memref<4x32xf32, #tpu.memory_space<vmem>>, %arg8: memref<1x32xf32, #tpu.memory_space<vmem>>, %arg9: memref<1x32xf32, #tpu.memory_space<vmem>>, %arg10: memref<2x32x256xf32, #tpu.memory_space<vmem>>) attributes {dimension_semantics = [#tpu.dimension_semantics<parallel>], iteration_bounds = array<i64: 1>, scalar_prefetch = 0 : i64, scratch_operands = 0 : i64, tpu.core_type = #tpu.core_type<tc>, window_params = [{transform_indices = @transform_0, window_bounds = array<i64: 2, 32, 256>}, {pipeline_mode = #tpu.pipeline_mode<synchronous>, transform_indices = @transform_1, window_bounds = array<i64: 32, 4>}, {pipeline_mode = #tpu.pipeline_mode<synchronous>, transform_indices = @transform_2, window_bounds = array<i64: 32, 4>}, {pipeline_mode = #tpu.pipeline_mode<synchronous>, transform_indices = @transform_3, window_bounds = array<i64: 4, 32>}, {pipeline_mode = #tpu.pipeline_mode<synchronous>, transform_indices = @transform_4, window_bounds = array<i64: 32, 4>}, {pipeline_mode = #tpu.pipeline_mode<synchronous>, transform_indices = @transform_5, window_bounds = array<i64: 32, 4>}, {pipeline_mode = #tpu.pipeline_mode<synchronous>, transform_indices = @transform_6, window_bounds = array<i64: 4, 32>}, {pipeline_mode = #tpu.pipeline_mode<synchronous>, transform_indices = @transform_7, window_bounds = array<i64: 1, 32>}, {pipeline_mode = #tpu.pipeline_mode<synchronous>, transform_indices = @transform_8, window_bounds = array<i64: 1, 32>}, {transform_indices = @transform_9, window_bounds = array<i64: 2, 32, 256>}]} {
    %c0 = arith.constant 0 : index
    %c0_0 = arith.constant 0 : index
    %c0_1 = arith.constant 0 : index
    %0 = vector.load %arg1[%c0, %c0_0, %c0_1] : memref<2x32x256xf32, #tpu.memory_space<vmem>>, vector<2x32x256xf32>
    %cst = arith.constant dense<0.000000e+00> : vector<2x32xf32>
    %1 = vector.multi_reduction <add>, %0, %cst [2] : vector<2x32x256xf32> to vector<2x32xf32>
    %2 = arith.mulf %0, %0 : vector<2x32x256xf32>
    %cst_2 = arith.constant dense<0.000000e+00> : vector<2x32xf32>
    %3 = vector.multi_reduction <add>, %2, %cst_2 [2] : vector<2x32x256xf32> to vector<2x32xf32>
    %cst_3 = arith.constant dense<0xFF800000> : vector<2x32xf32>
    %4 = vector.multi_reduction <maximumf>, %0, %cst_3 [2] : vector<2x32x256xf32> to vector<2x32xf32>
    %cst_4 = arith.constant 3.906250e-03 : f32
    %5 = vector.broadcast %cst_4 : f32 to vector<2x32xf32>
    %6 = arith.mulf %1, %5 : vector<2x32xf32>
    %7 = arith.mulf %1, %6 : vector<2x32xf32>
    %8 = arith.subf %3, %7 : vector<2x32xf32>
    %cst_5 = arith.constant 0.00392156886 : f32
    %9 = vector.broadcast %cst_5 : f32 to vector<2x32xf32>
    %10 = arith.mulf %8, %9 : vector<2x32xf32>
    %cst_6 = arith.constant 9.99999974E-6 : f32
    %11 = vector.broadcast %cst_6 : f32 to vector<2x32xf32>
    %12 = arith.addf %10, %11 : vector<2x32xf32>
    %13 = math.sqrt %12 : vector<2x32xf32>
    %c0_7 = arith.constant 0 : index
    %c0_8 = arith.constant 0 : index
    %14 = vector.load %arg2[%c0_7, %c0_8] : memref<32x4xf32, #tpu.memory_space<vmem>>, vector<32x4xf32>
    %cst_9 = arith.constant dense<0.000000e+00> : vector<2x4xf32>
    %15 = tpu.matmul %6, %14, %cst_9 {dimension_numbers = #tpu.dot_dimension_numbers<[1], [0], [0], [1], [0, 0, 1, 1], [], []>} : vector<2x32xf32>, vector<32x4xf32>, vector<2x4xf32> -> vector<2x4xf32>
    %c0_10 = arith.constant 0 : index
    %c0_11 = arith.constant 0 : index
    %16 = vector.load %arg3[%c0_10, %c0_11] : memref<32x4xf32, #tpu.memory_space<vmem>>, vector<32x4xf32>
    %cst_12 = arith.constant dense<0.000000e+00> : vector<2x4xf32>
    %17 = tpu.matmul %13, %16, %cst_12 {dimension_numbers = #tpu.dot_dimension_numbers<[1], [0], [0], [1], [0, 0, 1, 1], [], []>} : vector<2x32xf32>, vector<32x4xf32>, vector<2x4xf32> -> vector<2x4xf32>
    %18 = arith.addf %15, %17 : vector<2x4xf32>
    %cst_13 = arith.constant 0.000000e+00 : f32
    %19 = vector.broadcast %cst_13 : f32 to vector<2x4xf32>
    %20 = arith.maximumf %18, %19 : vector<2x4xf32>
    %c0_14 = arith.constant 0 : index
    %c0_15 = arith.constant 0 : index
    %21 = vector.load %arg4[%c0_14, %c0_15] : memref<4x32xf32, #tpu.memory_space<vmem>>, vector<4x32xf32>
    %cst_16 = arith.constant dense<0.000000e+00> : vector<2x32xf32>
    %22 = tpu.matmul %20, %21, %cst_16 {dimension_numbers = #tpu.dot_dimension_numbers<[1], [0], [0], [1], [0, 0, 1, 1], [], []>} : vector<2x4xf32>, vector<4x32xf32>, vector<2x32xf32> -> vector<2x32xf32>
    %c0_17 = arith.constant 0 : index
    %c0_18 = arith.constant 0 : index
    %23 = vector.load %arg8[%c0_17, %c0_18] : memref<1x32xf32, #tpu.memory_space<vmem>>, vector<1x32xf32>
    %24 = vector.broadcast %23 : vector<1x32xf32> to vector<2x32xf32>
    %25 = arith.mulf %22, %24 : vector<2x32xf32>
    %c0_19 = arith.constant 0 : index
    %c0_20 = arith.constant 0 : index
    %26 = vector.load %arg9[%c0_19, %c0_20] : memref<1x32xf32, #tpu.memory_space<vmem>>, vector<1x32xf32>
    %27 = vector.broadcast %26 : vector<1x32xf32> to vector<2x32xf32>
    %28 = arith.addf %25, %27 : vector<2x32xf32>
    %29 = arith.negf %28 : vector<2x32xf32>
    %30 = math.exp %29 : vector<2x32xf32>
    %cst_21 = arith.constant 1.000000e+00 : f32
    %31 = vector.broadcast %cst_21 : f32 to vector<2x32xf32>
    %32 = arith.addf %31, %30 : vector<2x32xf32>
    %33 = arith.divf %31, %32 : vector<2x32xf32>
    %c0_22 = arith.constant 0 : index
    %c0_23 = arith.constant 0 : index
    %34 = vector.load %arg5[%c0_22, %c0_23] : memref<32x4xf32, #tpu.memory_space<vmem>>, vector<32x4xf32>
    %cst_24 = arith.constant dense<0.000000e+00> : vector<2x4xf32>
    %35 = tpu.matmul %4, %34, %cst_24 {dimension_numbers = #tpu.dot_dimension_numbers<[1], [0], [0], [1], [0, 0, 1, 1], [], []>} : vector<2x32xf32>, vector<32x4xf32>, vector<2x4xf32> -> vector<2x4xf32>
    %c0_25 = arith.constant 0 : index
    %c0_26 = arith.constant 0 : index
    %36 = vector.load %arg6[%c0_25, %c0_26] : memref<32x4xf32, #tpu.memory_space<vmem>>, vector<32x4xf32>
    %cst_27 = arith.constant dense<0.000000e+00> : vector<2x4xf32>
    %37 = tpu.matmul %33, %36, %cst_27 {dimension_numbers = #tpu.dot_dimension_numbers<[1], [0], [0], [1], [0, 0, 1, 1], [], []>} : vector<2x32xf32>, vector<32x4xf32>, vector<2x4xf32> -> vector<2x4xf32>
    %38 = arith.addf %35, %37 : vector<2x4xf32>
    %cst_28 = arith.constant 0.000000e+00 : f32
    %39 = vector.broadcast %cst_28 : f32 to vector<2x4xf32>
    %40 = arith.maximumf %38, %39 : vector<2x4xf32>
    %c0_29 = arith.constant 0 : index
    %c0_30 = arith.constant 0 : index
    %41 = vector.load %arg7[%c0_29, %c0_30] : memref<4x32xf32, #tpu.memory_space<vmem>>, vector<4x32xf32>
    %cst_31 = arith.constant dense<0.000000e+00> : vector<2x32xf32>
    %42 = tpu.matmul %40, %41, %cst_31 {dimension_numbers = #tpu.dot_dimension_numbers<[1], [0], [0], [1], [0, 0, 1, 1], [], []>} : vector<2x4xf32>, vector<4x32xf32>, vector<2x32xf32> -> vector<2x32xf32>
    %43 = arith.negf %42 : vector<2x32xf32>
    %44 = math.exp %43 : vector<2x32xf32>
    %cst_32 = arith.constant 1.000000e+00 : f32
    %45 = vector.broadcast %cst_32 : f32 to vector<2x32xf32>
    %46 = arith.addf %45, %44 : vector<2x32xf32>
    %47 = arith.divf %45, %46 : vector<2x32xf32>
    %48 = tpu.transpose %47, [1, 0] : vector<2x32xf32> -> vector<32x2xf32>
    %c0_33 = arith.constant 0 : index
    %c0_34 = arith.constant 0 : index
    %c0_35 = arith.constant 0 : index
    %49 = vector.load %arg1[%c0_33, %c0_34, %c0_35] : memref<2x32x256xf32, #tpu.memory_space<vmem>>, vector<1x32x256xf32>
    %50 = vector.shape_cast %49 : vector<1x32x256xf32> to vector<32x256xf32>
    %51 = vector.extract_strided_slice %48 {offsets = [0, 0], sizes = [32, 1], strides = [1, 1]} : vector<32x2xf32> to vector<32x1xf32>
    %52 = vector.broadcast %51 : vector<32x1xf32> to vector<32x256xf32>
    %53 = arith.mulf %50, %52 : vector<32x256xf32>
    %c0_36 = arith.constant 0 : index
    %c0_37 = arith.constant 0 : index
    %c0_38 = arith.constant 0 : index
    %54 = vector.load %arg10[%c0_36, %c0_37, %c0_38] : memref<2x32x256xf32, #tpu.memory_space<vmem>>, vector<1x32x256xf32>
    %55 = vector.shape_cast %54 : vector<1x32x256xf32> to vector<32x256xf32>
    %56 = vector.shape_cast %53 : vector<32x256xf32> to vector<1x32x256xf32>
    tpu.vector_store %arg10[%c0_36, %c0_37, %c0_38], %56 {strides = array<i32>} : memref<2x32x256xf32, #tpu.memory_space<vmem>>, vector<1x32x256xf32>,
    %c1 = arith.constant 1 : index
    %c0_39 = arith.constant 0 : index
    %c0_40 = arith.constant 0 : index
    %57 = vector.load %arg1[%c1, %c0_39, %c0_40] : memref<2x32x256xf32, #tpu.memory_space<vmem>>, vector<1x32x256xf32>
    %58 = vector.shape_cast %57 : vector<1x32x256xf32> to vector<32x256xf32>
    %59 = vector.extract_strided_slice %48 {offsets = [0, 1], sizes = [32, 1], strides = [1, 1]} : vector<32x2xf32> to vector<32x1xf32>
    %60 = vector.broadcast %59 : vector<32x1xf32> to vector<32x256xf32>
    %61 = arith.mulf %58, %60 : vector<32x256xf32>
    %c1_41 = arith.constant 1 : index
    %c0_42 = arith.constant 0 : index
    %c0_43 = arith.constant 0 : index
    %62 = vector.load %arg10[%c1_41, %c0_42, %c0_43] : memref<2x32x256xf32, #tpu.memory_space<vmem>>, vector<1x32x256xf32>
    %63 = vector.shape_cast %62 : vector<1x32x256xf32> to vector<32x256xf32>
    %64 = vector.shape_cast %61 : vector<32x256xf32> to vector<1x32x256xf32>
    tpu.vector_store %arg10[%c1_41, %c0_42, %c0_43], %64 {strides = array<i32>} : memref<2x32x256xf32, #tpu.memory_space<vmem>>, vector<1x32x256xf32>,
    return
  }
  func.func @transform_0(%arg0: i32) -> (i32, i32, i32) {
    %c0_i32 = arith.constant 0 : i32
    %c0_i32_0 = arith.constant 0 : i32
    %c0_i32_1 = arith.constant 0 : i32
    return %arg0, %c0_i32, %c0_i32_0 : i32, i32, i32
  }
  func.func @transform_1(%arg0: i32) -> (i32, i32) {
    %c0_i32 = arith.constant 0 : i32
    %c0_i32_0 = arith.constant 0 : i32
    %c0_i32_1 = arith.constant 0 : i32
    return %c0_i32, %c0_i32_0 : i32, i32
  }
  func.func @transform_2(%arg0: i32) -> (i32, i32) {
    %c0_i32 = arith.constant 0 : i32
    %c0_i32_0 = arith.constant 0 : i32
    %c0_i32_1 = arith.constant 0 : i32
    return %c0_i32, %c0_i32_0 : i32, i32
  }
  func.func @transform_3(%arg0: i32) -> (i32, i32) {
    %c0_i32 = arith.constant 0 : i32
    %c0_i32_0 = arith.constant 0 : i32
    %c0_i32_1 = arith.constant 0 : i32
    return %c0_i32, %c0_i32_0 : i32, i32
  }
  func.func @transform_4(%arg0: i32) -> (i32, i32) {
    %c0_i32 = arith.constant 0 : i32
    %c0_i32_0 = arith.constant 0 : i32
    %c0_i32_1 = arith.constant 0 : i32
    return %c0_i32, %c0_i32_0 : i32, i32
  }
  func.func @transform_5(%arg0: i32) -> (i32, i32) {
    %c0_i32 = arith.constant 0 : i32
    %c0_i32_0 = arith.constant 0 : i32
    %c0_i32_1 = arith.constant 0 : i32
    return %c0_i32, %c0_i32_0 : i32, i32
  }
  func.func @transform_6(%arg0: i32) -> (i32, i32) {
    %c0_i32 = arith.constant 0 : i32
    %c0_i32_0 = arith.constant 0 : i32
    %c0_i32_1 = arith.constant 0 : i32
    return %c0_i32, %c0_i32_0 : i32, i32
  }
  func.func @transform_7(%arg0: i32) -> (i32, i32) {
    %c0_i32 = arith.constant 0 : i32
    %c0_i32_0 = arith.constant 0 : i32
    %c0_i32_1 = arith.constant 0 : i32
    return %c0_i32, %c0_i32_0 : i32, i32
  }
  func.func @transform_8(%arg0: i32) -> (i32, i32) {
    %c0_i32 = arith.constant 0 : i32
    %c0_i32_0 = arith.constant 0 : i32
    %c0_i32_1 = arith.constant 0 : i32
    return %c0_i32, %c0_i32_0 : i32, i32
  }
  func.func @transform_9(%arg0: i32) -> (i32, i32, i32) {
    %c0_i32 = arith.constant 0 : i32
    %c0_i32_0 = arith.constant 0 : i32
    %c0_i32_1 = arith.constant 0 : i32
    return %arg0, %c0_i32, %c0_i32_0 : i32, i32, i32
  }
}

</mosaic_0001>

<bundles_post_ra>
// kernel: cs_attention.1
= control target key start
LH: loop header
LB: loop body
LE: loop exit
PB: predicated region body
PF: predicated region fallthrough
CT: control target
= control target key end

     0   :  { %v288_v55 = vlaneseq  ;;  %vm293_vm0 = vcmask 130112   ;;  %vm297_vm1 = vcmask 195712   ;;  %vm301_vm2 = vcmask 261312   ;;  %s1235_s0 = inlined_call_operand.vmem [shape: f32[2,32,256], index: 0, kind: input, shape index: {}]   ;;  %s1236_s1 = inlined_call_operand.vmem [shape: f32[32,4], index: 1, kind: input, shape index: {}]   ;;  %s1237_s2 = inlined_call_operand.vmem [shape: f32[32,4], index: 2, kind: input, shape index: {}]   ;;  %s1238_s7 = inlined_call_operand.vmem [shape: f32[1,32], index: 7, kind: input, shape index: {}]   ;;  %s1239_s8 = inlined_call_operand.vmem [shape: f32[1,32], index: 8, kind: input, shape index: {}]   ;;  %s1240_s3 = inlined_call_operand.vmem [shape: f32[4,32], index: 3, kind: input, shape index: {}]   ;;  %s1241_s4 = inlined_call_operand.vmem [shape: f32[32,4], index: 4, kind: input, shape index: {}]   ;;  %s1242_s5 = inlined_call_operand.vmem [shape: f32[32,4], index: 5, kind: input, shape index: {}]   ;;  %s1243_s6 = inlined_call_operand.vmem [shape: f32[4,32], index: 6, kind: input, shape index: {}]   ;;  %s1244_s9 = inlined_call_operand.vmem [shape: f32[2,32,256], index: 9, kind: output, shape index: {}]  }
   0x1   :  { %v800_v0 = vld [vmem:[%s1235_s0 + $0x40] sm:$0xff]  ;;  %v805_v1 = vld [vmem:[%s1235_s0 + $0x48] sm:$0xff]  ;;  %v836_v9 = vld [vmem:[%s1235_s0 + $0x50] sm:$0xff]  ;;  %vm310_vm3 = vcmask 1041409   ;;  %vm1245_vm4 = vcmask 261120  }
   0x2   :  { %v810_v2 = vld [vmem:[%s1235_s0 + $0x20] sm:$0xff]  ;;  %v60_v3 = vadd.f32 %v805_v1, %v800_v0  ;;  %v817_v4 = vld [vmem:[%s1235_s0 + $0x28] sm:$0xff]  ;;  %v841_v10 = vld [vmem:[%s1235_s0 + $0x58] sm:$0xff]  ;;  %v80_v27 = vmul.f32 %v800_v0, %v800_v0  ;;  %v81_v28 = vmul.f32 %v805_v1, %v805_v1  ;;  %v82_v29 = vmul.f32 %v836_v9, %v836_v9 }
   0x3   :  { %v822_v5 = vld [vmem:[%s1235_s0] sm:$0xff]  ;;  %v827_v6 = vld [vmem:[%s1235_s0 + $0x8] sm:$0xff]  ;;  %v54_v7 = vadd.f32 %v817_v4, %v810_v2  ;;  %v856_v13 = vld [vmem:[%s1235_s0 + $0x10] sm:$0xff]  ;;  %v63_v15 = vadd.f32 %v841_v10, %v836_v9  ;;  %v83_v30 = vmul.f32 %v841_v10, %v841_v10  ;;  %v76_v38 = vmul.f32 %v810_v2, %v810_v2 }
   0x4   :  { %v48_v8 = vadd.f32 %v827_v6, %v822_v5  ;;  %61 = vadd.xlane.f32.xlu1 %v60_v3  ;;  %v846_v11 = vld [vmem:[%s1235_s0 + $0x60] sm:$0xff]  ;;  %v851_v12 = vld [vmem:[%s1235_s0 + $0x68] sm:$0xff]  ;;  %v861_v14 = vld [vmem:[%s1235_s0 + $0x18] sm:$0xff]  ;;  %v72_v20 = vmul.f32 %v822_v5, %v822_v5  ;;  %v73_v21 = vmul.f32 %v827_v6, %v827_v6  ;;  %v74_v31 = vmul.f32 %v856_v13, %v856_v13 }
   0x5   :  { %55 = vadd.xlane.f32.xlu2 %v54_v7  ;;  %v66_v16 = vadd.f32 %v851_v12, %v846_v11  ;;  %v51_v17 = vadd.f32 %v861_v14, %v856_v13  ;;  %v872_v18 = vld [vmem:[%s1235_s0 + $0x70] sm:$0xff]  ;;  %v877_v19 = vld [vmem:[%s1235_s0 + $0x78] sm:$0xff]  ;;  %v75_v32 = vmul.f32 %v861_v14, %v861_v14  ;;  %v100_v33 = vadd.f32 %v81_v28, %v80_v27  ;;  %v273_v50 = vld [vmem:[%s1236_s1 + $0x8] sm:$0xff] }
   0x6   :  { %49 = vadd.xlane.f32.xlu0 %v48_v8  ;;  %v886_v22 = vld [vmem:[%s1235_s0 + $0x30] sm:$0xff]  ;;  %v891_v23 = vld [vmem:[%s1235_s0 + $0x38] sm:$0xff]  ;;  %v69_v24 = vadd.f32 %v877_v19, %v872_v18  ;;  %v88_v25 = vadd.f32 %v73_v21, %v72_v20  ;;  %v103_v34 = vadd.f32 %v83_v30, %v82_v29  ;;  %v84_v36 = vmul.f32 %v846_v11, %v846_v11  ;;  %v272_v51 = vld [vmem:[%s1236_s1] sm:$0xff] }
   0x7   :  { %v57_v26 = vadd.f32 %v891_v23, %v886_v22  ;;  %v91_v35 = vadd.f32 %v75_v32, %v74_v31  ;;  %v85_v37 = vmul.f32 %v851_v12, %v851_v12  ;;  %v78_v39 = vmul.f32 %v886_v22, %v886_v22  ;;  %v275_v48 = vld [vmem:[%s1236_s1 + $0x18] sm:$0xff]  ;;  %v274_v49 = vld [vmem:[%s1236_s1 + $0x10] sm:$0xff] }
   0x8   :  { %v79_v40 = vmul.f32 %v891_v23, %v891_v23  ;;  %v77_v41 = vmul.f32 %v817_v4, %v817_v4  ;;  %v86_v45 = vmul.f32 %v872_v18, %v872_v18  ;;  %v87_v46 = vmul.f32 %v877_v19, %v877_v19  ;;  %372 = vmatpush.msra.mxu1 %v275_v48  ;;  %v279_v28 = vld [vmem:[%s1237_s2 + $0x18] sm:$0xff]  ;;  %v278_v29 = vld [vmem:[%s1237_s2 + $0x10] sm:$0xff] }
   0x9   :  { %v106_v42 = vadd.f32 %v85_v37, %v84_v36  ;;  %v939_v56 = vand.u32 127, %v288_v55  ;;  %327 = vmatpush.msra.mxu0 %v279_v28 }
   0xa   :  { %v97_v43 = vadd.f32 %v79_v40, %v78_v39  ;;  %v94_v44 = vadd.f32 %v77_v41, %v76_v38  ;;  %v109_v47 = vadd.f32 %v87_v46, %v86_v45  ;;  %373 = vmatpush.msra.mxu1 %v274_v49  ;;  %v277_v38 = vld [vmem:[%s1237_s2 + $0x8] sm:$0xff] }
   0xb   :  { %v942_v58 = vadd.s32 4294967288, %v939_v56  ;;  %v947_v3 = vadd.s32 4294967280, %v939_v56  ;;  %v955_v21 = vadd.s32 4294967272, %v939_v56  ;;  %328 = vmatpush.msra.mxu0 %v278_v29 }
   0xc   :  { %64 = vadd.xlane.f32.xlu1 %v63_v15  ;;  %374 = vmatpush.msra.mxu1 %v273_v50 }
   0xd   :  { %67 = vadd.xlane.f32.xlu2 %v66_v16  ;;  %329 = vmatpush.msra.mxu0 %v277_v38 }
   0xe   :  { %52 = vadd.xlane.f32.xlu0 %v51_v17  ;;  %375 = vmatpush.msra.mxu1 %v272_v51 }
  0x14   :  { %70 = vadd.xlane.f32.xlu1 %v69_v24 }
  0x15   :  { %89 = vadd.xlane.f32.xlu2 %v88_v25 }
  0x16   :  { %58 = vadd.xlane.f32.xlu0 %v57_v26 }
  0x1c   :  { %101 = vadd.xlane.f32.xlu1 %v100_v33 }
  0x1d   :  { %104 = vadd.xlane.f32.xlu2 %v103_v34 }
  0x1e   :  { %92 = vadd.xlane.f32.xlu0 %v91_v35 }
  0x24   :  { %107 = vadd.xlane.f32.xlu1 %v106_v42 }
  0x25   :  { %98 = vadd.xlane.f32.xlu2 %v97_v43  ;;  %v276_v43 = vld [vmem:[%s1237_s2] sm:$0xff] }
  0x26   :  { %95 = vadd.xlane.f32.xlu0 %v94_v44  ;;  %330 = vmatpush.msra.mxu0 %v276_v43 }
  0x2e   :  { %110 = vadd.xlane.f32.xlu0 %v109_v47 }
  0x77   :  { %v62_v52 = vpop.xlane.xlu1 %61 }
  0x78   :  { %v937_v53 = vpop.xlane.xlu2 %55  ;;  %v140_v63 = vmul.f32 0.00390625, %v62_v52 }
  0x79   :  { %v50_v54 = vpop.xlane.xlu0 %49  ;;  %v138_v20 = vmul.f32 0.00390625, %v937_v53 }
  0x7a   :  { %v136_v7 = vmul.f32 0.00390625, %v50_v54  ;;  %v350_v15 = vperm.slane %v140_v63, %v939_v56  ;;  %v148_v48 = vmul.f32 %v140_v63, %v62_v52 }
  0x7b   :  { %v346_v30 = vperm.slane %v138_v20, %v947_v3 }
  0x7c   :  { %v144_v24 = vmul.f32 %v136_v7, %v50_v54  ;;  %v343_v25 = vperm.slane %v136_v7, %v939_v56 }
  0x7f   :  { %v65_v57 = vpop.xlane.xlu1 %64 }
  0x80   :  { %v141_v59 = vmul.f32 0.00390625, %v65_v57  ;;  %v944_v60 = vpop.xlane.xlu2 %67 }
  0x81   :  { %v53_v61 = vpop.xlane.xlu0 %52  ;;  %v142_v8 = vmul.f32 0.00390625, %v944_v60 }
  0x82   :  { %v137_v62 = vmul.f32 0.00390625, %v53_v61  ;;  %v351_v16 = vperm.slane %v141_v59, %v942_v58  ;;  %v149_v50 = vmul.f32 %v141_v59, %v65_v57 }
  0x83   :  { %v353_v26 = vperm.slane %v142_v8, %v947_v3  ;;  %v150_v59 = vmul.f32 %v142_v8, %v944_v60 }
  0x84   :  { %v344_v17 = vperm.slane %v137_v62, %v942_v58  ;;  %v352_v31 = vsel %vm293_vm0, %v351_v16, %v350_v15  ;;  %v145_v51 = vmul.f32 %v137_v62, %v53_v61  ;;  %v146_v61 = vmul.f32 %v138_v20, %v937_v53 }
  0x85   :  { %v354_v42 = vsel %vm297_vm1, %v353_v26, %v352_v31 }
  0x86   :  { %v345_v35 = vsel %vm293_vm0, %v344_v17, %v343_v25 }
  0x87   :  { %v959_v27 = vpop.xlane.xlu1 %70  ;;  %v347_v44 = vsel %vm297_vm1, %v346_v30, %v345_v35 }
  0x88   :  { %v970_v32 = vmul.f32 0.00390625, %v959_v27  ;;  %v90_v33 = vpop.xlane.xlu2 %89 }
  0x89   :  { %v59_v34 = vpop.xlane.xlu0 %58  ;;  %v152_v36 = vsub.f32 %v90_v33, %v144_v24 }
  0x8a   :  { %v139_v37 = vmul.f32 0.00390625, %v59_v34  ;;  %v355_v39 = vperm.slane %v970_v32, %v955_v21 }
  0x8b   :  { %v160_v40 = vmul.f32 0.003921569, %v152_v36 }
  0x8c   :  { %v348_v41 = vperm.slane %v139_v37, %v955_v21  ;;  %v356_v45 = vsel %vm301_vm2, %v355_v39, %v354_v42  ;;  %v147_v62 = vmul.f32 %v139_v37, %v59_v34 }
  0x8d   :  { %v985_v46 = vadd.f32 1e-05, %v160_v40 }
  0x8e   :  { %v349_v47 = vsel %vm301_vm2, %v348_v41, %v347_v44 }
  0x8f   :  { %v357_v49 = vsel %vm310_vm3, %v356_v45, %v349_v47  ;;  %v102_v54 = vpop.xlane.xlu1 %101  ;;  %721 = vrsqrt.f32 %v985_v46  ;;  %v151_v45 = vmul.f32 %v970_v32, %v959_v27  ;;  %vm183_vm5 = vcmp.eq.f32.partialorder %v985_v46, inf }
  0x90   :  { %685 = vmatmul.msk.f32.vlgmr.msra.gmra.mxu1 %vm1245_vm4, %v357_v49  ;;  %v156_v55 = vsub.f32 %v102_v54, %v148_v48  ;;  %v105_v7 = vpop.xlane.xlu2 %104  ;;  %vm185_vm9 = vcmp.eq.f32.partialorder %v985_v46, 0.0 }
  0x91   :  { %v93_v15 = vpop.xlane.xlu0 %92  ;;  %v157_v16 = vsub.f32 %v105_v7, %v149_v50 }
  0x92   :  { %v153_v17 = vsub.f32 %v93_v15, %v145_v51  ;;  %v164_v24 = vmul.f32 0.003921569, %v156_v55 }
  0x93   :  { %v165_v25 = vmul.f32 0.003921569, %v157_v16 }
  0x94   :  { %v161_v26 = vmul.f32 0.003921569, %v153_v17  ;;  %v991_v28 = vadd.f32 1e-05, %v164_v24 }
  0x95   :  { %v993_v52 = vadd.f32 1e-05, %v165_v25  ;;  %v722_v57 = vpop.eup %721 }
  0x96   :  { %v995_v63 = vadd.f32 1e-05, %v161_v26  ;;  %723 = vrsqrt.f32 %v991_v28  ;;  %v177_v35 = vmul.f32 %v722_v57, %v985_v46  ;;  %vm231_vm6 = vcmp.eq.f32.partialorder %v991_v28, inf }
  0x97   :  { %725 = vrsqrt.f32 %v993_v52  ;;  %v108_v29 = vpop.xlane.xlu1 %107  ;;  %vm233_vm10 = vcmp.eq.f32.partialorder %v991_v28, 0.0  ;;  %vm243_vm11 = vcmp.eq.f32.partialorder %v993_v52, inf  ;;  %vm245_vm12 = vcmp.eq.f32.partialorder %v993_v52, 0.0 }
  0x98   :  { %727 = vrsqrt.f32 %v995_v63  ;;  %v158_v30 = vsub.f32 %v108_v29, %v150_v59  ;;  %v99_v31 = vpop.xlane.xlu2 %98  ;;  %v178_v37 = vmul.f32 %v722_v57, %v177_v35  ;;  %v186_v35 = vand.u32 2147483648, %v985_v46 }
  0x99   :  { %v96_v33 = vpop.xlane.xlu0 %95  ;;  %v155_v36 = vsub.f32 %v99_v31, %v147_v62  ;;  %vm195_vm7 = vcmp.eq.f32.partialorder %v995_v63, inf  ;;  %vm197_vm8 = vcmp.eq.f32.partialorder %v995_v63, 0.0 }
  0x9a   :  { %v154_v38 = vsub.f32 %v96_v33, %v146_v61  ;;  %v166_v39 = vmul.f32 0.003921569, %v158_v30  ;;  %v179_v50 = vmul.f32 0.5, %v178_v37 }
  0x9b   :  { %v163_v40 = vmul.f32 0.003921569, %v155_v36 }
  0x9c   :  { %v162_v60 = vmul.f32 0.003921569, %v154_v38  ;;  %v724_v8 = vpop.eup %723  ;;  %v1003_v41 = vadd.f32 1e-05, %v166_v39  ;;  %v180_v27 = vsub.f32 1.5, %v179_v50 }
  0x9d   :  { %v726_v53 = vpop.eup %725  ;;  %v1005_v20 = vadd.f32 1e-05, %v163_v40  ;;  %v225_v43 = vmul.f32 %v724_v8, %v991_v28 }
  0x9e   :  { %v1007_v34 = vadd.f32 1e-05, %v162_v60  ;;  %v728_v42 = vpop.eup %727  ;;  %v237_v44 = vmul.f32 %v726_v53, %v993_v52  ;;  %729 = vrsqrt.f32 %v1003_v41  ;;  %v181_v39 = vmul.f32 %v722_v57, %v180_v27 }
  0x9f   :  { %v189_v47 = vmul.f32 %v728_v42, %v995_v63  ;;  %731 = vrsqrt.f32 %v1005_v20  ;;  %v226_v54 = vmul.f32 %v724_v8, %v225_v43  ;;  %vm255_vm13 = vcmp.eq.f32.partialorder %v1003_v41, inf }
  0xa0   :  { %733 = vrsqrt.f32 %v1007_v34  ;;  %v238_v55 = vmul.f32 %v726_v53, %v237_v44  ;;  %vm207_vm14 = vcmp.eq.f32.partialorder %v1007_v34, inf  ;;  %vm209_vm15 = vcmp.eq.f32.partialorder %v1007_v34, 0.0 }
  0xa1   :  { %v111_v48 = vpop.xlane.xlu0 %110  ;;  %v190_v51 = vmul.f32 %v728_v42, %v189_v47  ;;  %v227_v17 = vmul.f32 0.5, %v226_v54  ;;  %vm219_vm4 = vcmp.eq.f32.partialorder %v1005_v20, inf }
  0xa2   :  { %v159_v49 = vsub.f32 %v111_v48, %v151_v45  ;;  %v239_v24 = vmul.f32 0.5, %v238_v55  ;;  %v198_v45 = vand.u32 2147483648, %v995_v63 }
  0xa3   :  { %v191_v15 = vmul.f32 0.5, %v190_v51  ;;  %v228_v29 = vsub.f32 1.5, %v227_v17 }
  0xa4   :  { %v167_v7 = vmul.f32 0.003921569, %v159_v49  ;;  %v730_v16 = vpop.eup %729  ;;  %v240_v30 = vsub.f32 1.5, %v239_v24  ;;  %v234_v49 = vand.u32 2147483648, %v991_v28  ;;  %v246_v24 = vand.u32 2147483648, %v993_v52 }
  0xa5   :  { %v732_v25 = vpop.eup %731  ;;  %v192_v32 = vsub.f32 1.5, %v191_v15  ;;  %v249_v59 = vmul.f32 %v730_v16, %v1003_v41  ;;  %v229_v43 = vmul.f32 %v724_v8, %v228_v29  ;;  %v182_v8 = vmul.f32 %v181_v39, %v985_v46 }
  0xa6   :  { %v1017_v26 = vadd.f32 1e-05, %v167_v7  ;;  %v734_v61 = vpop.eup %733  ;;  %v213_v62 = vmul.f32 %v732_v25, %v1005_v20  ;;  %v241_v44 = vmul.f32 %v726_v53, %v240_v30 }
  0xa7   :  { %v201_v31 = vmul.f32 %v734_v61, %v1007_v34  ;;  %v250_v33 = vmul.f32 %v730_v16, %v249_v59  ;;  %v193_v36 = vmul.f32 %v728_v42, %v192_v32  ;;  %v230_v55 = vmul.f32 %v229_v43, %v991_v28 }
  0xa8   :  { %735 = vrsqrt.f32 %v1017_v26  ;;  %v214_v38 = vmul.f32 %v732_v25, %v213_v62  ;;  %v242_v7 = vmul.f32 %v241_v44, %v993_v52  ;;  %v184_v62 = vsel %vm183_vm5, %v985_v46, %v182_v8 }
  0xa9   :  { %v202_v40 = vmul.f32 %v734_v61, %v201_v31  ;;  %v251_v60 = vmul.f32 0.5, %v250_v33  ;;  %v194_v57 = vmul.f32 %v193_v36, %v995_v63  ;;  %v232_v29 = vsel %vm231_vm6, %v991_v28, %v230_v55 }
  0xaa   :  { %v215_v37 = vmul.f32 0.5, %v214_v38  ;;  %v244_v30 = vsel %vm243_vm11, %v993_v52, %v242_v7  ;;  %v222_v38 = vand.u32 2147483648, %v1005_v20  ;;  %v187_v44 = vsel %vm185_vm9, %v186_v35, %v184_v62 }
  0xab   :  { %v203_v47 = vmul.f32 0.5, %v202_v40  ;;  %v252_v48 = vsub.f32 1.5, %v251_v60  ;;  %v196_v32 = vsel %vm195_vm7, %v995_v63, %v194_v57  ;;  %v235_v63 = vsel %vm233_vm10, %v234_v49, %v232_v29 }
  0xac   :  { %v216_v42 = vsub.f32 1.5, %v215_v37  ;;  %v199_v33 = vsel %vm197_vm8, %v198_v45, %v196_v32  ;;  %v258_v37 = vand.u32 2147483648, %v1003_v41  ;;  %vm257_vm5 = vcmp.eq.f32.partialorder %v1003_v41, 0.0 }
  0xad   :  { %v204_v53 = vsub.f32 1.5, %v203_v47  ;;  %v253_v51 = vmul.f32 %v730_v16, %v252_v48  ;;  %vm221_vm6 = vcmp.eq.f32.partialorder %v1005_v20, 0.0  ;;  %v292_v48 = vperm.slane %v199_v33, %v942_v58 }
  0xae   :  { %v736_v50 = vpop.eup %735  ;;  %v217_v54 = vmul.f32 %v732_v25, %v216_v42  ;;  %v290_v35 = vperm.slane %v187_v44, %v939_v56  ;;  %v303_v28 = vperm.slane %v235_v63, %v939_v56  ;;  %vm269_vm7 = vcmp.eq.f32.partialorder %v1017_v26, 0.0 }
  0xaf   :  { %v261_v15 = vmul.f32 %v736_v50, %v1017_v26  ;;  %v205_v17 = vmul.f32 %v734_v61, %v204_v53  ;;  %v254_v27 = vmul.f32 %v253_v51, %v1003_v41  ;;  %v210_v61 = vand.u32 2147483648, %v1007_v34 }
  0xb0   :  { %v218_v16 = vmul.f32 %v217_v54, %v1005_v20  ;;  %vm1246_vm8 = vcmask 261120   ;;  %vm386_vm9 = vcmask 1043456   ;;  %v115_v32 = vmax.f32 %v856_v13, %v861_v14 }
  0xb1   :  { %v262_v25 = vmul.f32 %v736_v50, %v261_v15  ;;  %v206_v59 = vmul.f32 %v205_v17, %v1007_v34  ;;  %v256_v39 = vsel %vm255_vm13, %v1003_v41, %v254_v27  ;;  %v270_v41 = vand.u32 2147483648, %v1017_v26 }
  0xb2   :  { %v220_v60 = vsel %vm219_vm4, %v1005_v20, %v218_v16  ;;  %v259_v45 = vsel %vm257_vm5, %v258_v37, %v256_v39  ;;  %vm267_vm4 = vcmp.eq.f32.partialorder %v1017_v26, inf  ;;  %v112_v27 = vmax.f32 %v822_v5, %v827_v6  ;;  %116 = vmax.xlane.f32.xlu2 %v115_v32 }
  0xb3   :  { %v263_v31 = vmul.f32 0.5, %v262_v25  ;;  %v208_v36 = vsel %vm207_vm14, %v1007_v34, %v206_v59  ;;  %v247_v34 = vsel %vm245_vm12, %v246_v24, %v244_v30  ;;  %v223_v57 = vsel %vm221_vm6, %v222_v38, %v220_v60 }
  0xb4   :  { %v211_v40 = vsel %vm209_vm15, %v210_v61, %v208_v36  ;;  %v304_v52 = vperm.slane %v247_v34, %v942_v58  ;;  %v306_v20 = vperm.slane %v259_v45, %v947_v3  ;;  %v300_v8 = vperm.slane %v223_v57, %v955_v21  ;;  %113 = vmax.xlane.f32.xlu1 %v112_v27  ;;  %v442_v34 = vld [vmem:[%s1241_s4 + $0x18] sm:$0xff]  ;;  %v441_v57 = vld [vmem:[%s1241_s4 + $0x10] sm:$0xff] }
  0xb5   :  { %v264_v43 = vsub.f32 1.5, %v263_v31  ;;  %v296_v42 = vperm.slane %v211_v40, %v947_v3  ;;  %v124_v16 = vmax.f32 %v800_v0, %v805_v1  ;;  %v127_v25 = vmax.f32 %v836_v9, %v841_v10 }
  0xb6   :  { %v305_v54 = vsel %vm293_vm0, %v304_v52, %v303_v28  ;;  %v118_v59 = vmax.f32 %v810_v2, %v817_v4  ;;  %v130_v61 = vmax.f32 %v846_v11, %v851_v12  ;;  %v121_v62 = vmax.f32 %v886_v22, %v891_v23 }
  0xb7   :  { %v265_v47 = vmul.f32 %v736_v50, %v264_v43  ;;  %v294_v50 = vsel %vm293_vm0, %v292_v48, %v290_v35  ;;  %v307_v7 = vsel %vm297_vm1, %v306_v20, %v305_v54  ;;  %125 = vmax.xlane.f32.xlu0 %v124_v16  ;;  %v133_v29 = vmax.f32 %v872_v18, %v877_v19  ;;  %v446_v35 = vld [vmem:[%s1242_s5 + $0x18] sm:$0xff] }
  0xb8   :  { %v298_v51 = vsel %vm297_vm1, %v296_v42, %v294_v50  ;;  %vm382_vm10 = vcmask 31744   ;;  %462 = vmatpush.msra.mxu3 %v446_v35 }
  0xb9   :  { %v266_v46 = vmul.f32 %v265_v47, %v1017_v26  ;;  %v302_v15 = vsel %vm301_vm2, %v300_v8, %v298_v51  ;;  %v439_v8 = vld [vmem:[%s1241_s4] sm:$0xff] }
  0xba   :  { %119 = vmax.xlane.f32.xlu2 %v118_v59 }
  0xbb   :  { %v268_v49 = vsel %vm267_vm4, %v1017_v26, %v266_v46  ;;  %v381_v26 = vld [vmem:[%s1240_s3] sm:$0xf]  ;;  %v440_v46 = vld [vmem:[%s1241_s4 + $0x8] sm:$0xff] }
  0xbc   :  { %v271_v53 = vsel %vm269_vm7, %v270_v41, %v268_v49  ;;  %686 = vmatpush.msk.msra.mxu2 %vm386_vm9, %v381_v26  ;;  %128 = vmax.xlane.f32.xlu1 %v127_v25 }
  0xbd   :  { %v308_v55 = vperm.slane %v271_v53, %v955_v21  ;;  %v444_v53 = vld [vmem:[%s1242_s5 + $0x8] sm:$0xff] }
  0xbe   :  { %507 = vmatpush.msrb.mxu2 %v442_v34 }
  0xbf   :  { %v309_v17 = vsel %vm301_vm2, %v308_v55, %v307_v7  ;;  %131 = vmax.xlane.f32.xlu0 %v130_v61  ;;  %v719_v7 = vld [vmem:[%s1238_s7] ss:$0 sm:$0xff] }
  0xc0   :  { %v311_v24 = vsel %vm310_vm3, %v309_v17, %v302_v15  ;;  %508 = vmatpush.msrb.mxu2 %v441_v57  ;;  %v720_v15 = vld [vmem:[%s1239_s8] ss:$0 sm:$0xff] }
  0xc1   :  { %684 = vmatmul.msk.f32.vlgmr.msra.gmra.mxu0 %vm1246_vm8, %v311_v24 }
  0xc2   :  { %134 = vmax.xlane.f32.xlu2 %v133_v29  ;;  %509 = vmatpush.msrb.mxu2 %v440_v46 }
  0xc4   :  { %122 = vmax.xlane.f32.xlu1 %v121_v62  ;;  %510 = vmatpush.msrb.mxu2 %v439_v8 }
 0x10d   :  { %v377_v30 = vpop.f32.mrf.mxu1 }
 0x125   :  { %v117_v39 = vpop.xlane.xlu2 %116 }
 0x126   :  { %v479_v44 = vperm.slane %v117_v39, %v942_v58  ;;  %v516_v39 = vld [vmem:[%s1243_s6] sm:$0xf] }
 0x127   :  { %v114_v38 = vpop.xlane.xlu1 %113  ;;  %691 = vmatpush.msk.msrb.mxu0 %vm386_vm9, %v516_v39 }
 0x128   :  { %v478_v43 = vperm.slane %v114_v38, %v939_v56 }
 0x12a   :  { %v126_v40 = vpop.xlane.xlu0 %125  ;;  %v480_v63 = vsel %vm293_vm0, %v479_v44, %v478_v43  ;;  %v745_v44 = vmov 1  }
 0x12b   :  { %v485_v45 = vperm.slane %v126_v40, %v939_v56  ;;  %v445_v56 = vld [vmem:[%s1242_s5 + $0x10] sm:$0xff]  ;;  %714 = vset.pattern.permute.xlu2 %v745_v44 }
 0x12c   :  { %463 = vmatpush.msra.mxu3 %v445_v56 }
 0x12d   :  { %v120_v37 = vpop.xlane.xlu2 %119 }
 0x12e   :  { %v481_v48 = vperm.slane %v120_v37, %v947_v3  ;;  %464 = vmatpush.msra.mxu3 %v444_v53 }
 0x12f   :  { %v129_v60 = vpop.xlane.xlu1 %128 }
 0x130   :  { %v486_v47 = vperm.slane %v129_v60, %v942_v58  ;;  %v482_v28 = vsel %vm297_vm1, %v481_v48, %v480_v63  ;;  %v746_v63 = vmov 0  }
 0x131   :  { %713 = vset.pattern.permute.xlu1 %v746_v63 }
 0x132   :  { %v132_v42 = vpop.xlane.xlu0 %131  ;;  %v487_v58 = vsel %vm293_vm0, %v486_v47, %v485_v45  ;;  %vm1247_vm0 = vmmov %vm1246_vm8 }
 0x133   :  { %v488_v52 = vperm.slane %v132_v42, %v947_v3  ;;  %vm1248_vm12 = vmmov %vm1247_vm0 }
 0x135   :  { %v135_v20 = vpop.xlane.xlu2 %134  ;;  %v489_v51 = vsel %vm297_vm1, %v488_v52, %v487_v58 }
 0x136   :  { %v490_v50 = vperm.slane %v135_v20, %v955_v21 }
 0x137   :  { %v123_v41 = vpop.xlane.xlu1 %122 }
 0x138   :  { %v483_v49 = vperm.slane %v123_v41, %v955_v21  ;;  %v491_v54 = vsel %vm301_vm2, %v490_v50, %v489_v51  ;;  %v443_v21 = vld [vmem:[%s1242_s5] sm:$0xff] }
 0x139   :  { %465 = vmatpush.msra.mxu3 %v443_v21 }
 0x13a   :  { %v484_v3 = vsel %vm301_vm2, %v483_v49, %v482_v28 }
 0x13b   :  { %v492_v55 = vsel %vm310_vm3, %v491_v54, %v484_v3 }
 0x13e   :  { %v332_v31 = vpop.f32.mrf.mxu0 }
 0x13f   :  { %v378_v33 = vadd.f32 %v377_v30, %v332_v31 }
 0x141   :  { %v380_v36 = vmax.f32 %v378_v33, 0.0 }
 0x143   :  { %687 = vmatmul.msk.f32.vlgmr.msra.gmra.mxu2 %vm382_vm10, %v380_v36 }
 0x14b   :  { %690 = vmatmul.msk.f32.vlgmr.msrb.gmra.mxu2 %vm1247_vm0, %v492_v55 }
 0x1c6   :  { %v407_v17 = vpop.f32.mrf.mxu2 }
 0x1c7   :  { %v414_v24 = vmul.f32 %v719_v7, %v407_v17 }
 0x1c9   :  { %v419_v26 = vadd.f32 %v720_v15, %v414_v24 }
 0x1cb   :  { %v688_v27 = vmul.f32 -1.442695, %v419_v26 }
 0x1cd   :  { %737 = vpow2.f32 %v688_v27 }
 0x1ce   :  { %v512_v40 = vpop.f32.mrf.mxu2 }
 0x1d3   :  { %v738_v32 = vpop.eup %737 }
 0x1d4   :  { %v423_v16 = vadd.f32 1.0, %v738_v32 }
 0x1d6   :  { %739 = vrcp.f32 %v423_v16  ;;  %v435_v62 = vand.u32 2147483648, %v423_v16  ;;  %v433_v30 = vand.u32 2147483647, %v423_v16  ;;  %vm429_vm2 = vweird.f32 %v423_v16 }
 0x1d8   :  { %v436_v33 = vor.u32 1.1754944e-38, %v435_v62  ;;  %vm434_vm11 = vcmp.eq.f32.partialorder %v433_v30, 8.507059e+37 }
 0x1dc   :  { %v740_v25 = vpop.eup %739 }
 0x1dd   :  { %v425_v59 = vmul.f32 %v740_v25, %v423_v16  ;;  %vm430_vm1 = vweird.f32 %v740_v25 }
 0x1de   :  { %vm431_vm3 = vmor %vm429_vm2, %vm430_vm1 }
 0x1df   :  { %v426_v61 = vsub.f32 1.0, %v425_v59 }
 0x1e1   :  { %v427_v29 = vmul.f32 %v740_v25, %v426_v61 }
 0x1e3   :  { %v428_v31 = vadd.f32 %v740_v25, %v427_v29 }
 0x1e5   :  { %v432_v36 = vsel %vm431_vm3, %v740_v25, %v428_v31 }
 0x1e6   :  { %v437_v38 = vsel %vm434_vm11, %v436_v33, %v432_v36 }
 0x1e7   :  { %689 = vmatmul.msk.f32.vlgmr.msra.gmra.mxu3 %vm1248_vm12, %v437_v38 }
 0x26a   :  { %v467_v60 = vpop.f32.mrf.mxu3 }
 0x26b   :  { %v513_v37 = vadd.f32 %v512_v40, %v467_v60 }
 0x26d   :  { %v515_v43 = vmax.f32 %v513_v37, 0.0 }
 0x26f   :  { %692 = vmatmul.msk.f32.vlgmr.msrb.gmra.mxu0 %vm382_vm10, %v515_v43 }
 0x2ec   :  { %v540_v34 = vpop.f32.mrf.mxu0 }
 0x2ed   :  { %v693_v45 = vmul.f32 -1.442695, %v540_v34 }
 0x2ef   :  { %741 = vpow2.f32 %v693_v45 }
 0x2f5   :  { %v742_v47 = vpop.eup %741 }
 0x2f6   :  { %v546_v48 = vadd.f32 1.0, %v742_v47 }
 0x2f8   :  { %743 = vrcp.f32 %v546_v48  ;;  %v558_v35 = vand.u32 2147483648, %v546_v48  ;;  %v556_v58 = vand.u32 2147483647, %v546_v48  ;;  %vm552_vm14 = vweird.f32 %v546_v48 }
 0x2fa   :  { %v559_v52 = vor.u32 1.1754944e-38, %v558_v35  ;;  %vm557_vm5 = vcmp.eq.f32.partialorder %v556_v58, 8.507059e+37 }
 0x2fe   :  { %v744_v57 = vpop.eup %743 }
 0x2ff   :  { %v548_v42 = vmul.f32 %v744_v57, %v546_v48  ;;  %vm553_vm13 = vweird.f32 %v744_v57 }
 0x300   :  { %vm554_vm15 = vmor %vm552_vm14, %vm553_vm13 }
 0x301   :  { %v549_v46 = vsub.f32 1.0, %v548_v42 }
 0x303   :  { %v550_v56 = vmul.f32 %v744_v57, %v549_v46 }
 0x305   :  { %v551_v28 = vadd.f32 %v744_v57, %v550_v56 }
 0x307   :  { %v555_v41 = vsel %vm554_vm15, %v744_v57, %v551_v28 }
 0x308   :  { %v560_v20 = vsel %vm557_vm5, %v559_v52, %v555_v41 }
 0x309   :  { %562 = vxpose.xlu0.b32.start.end [1/1] (short) (narrow) %v560_v20, 32 }
 0x370   :  { %718 = vset.pattern.permute.xlu0 %v745_v44 }
 0x3ad   :  { %v578_v49 = vpop.trf.xlu0 }
 0x3ae   :  { %648 = vperm.xlu2 %714, %v578_v49   ;;  %604 = vperm.xlu1 %713, %v578_v49  }
 0x3b5   :  { %v579_v50 = vpop.trf.xlu0 }
 0x3b6   :  { %715 = vset.pattern.permute.xlu2 %v746_v63 }
 0x3b7   :  { %609 = vperm.xlu2 %715, %v579_v50  }
 0x3bd   :  { %v580_v8 = vpop.trf.xlu0 }
 0x3bf   :  { %614 = vperm.xlu2 %715, %v580_v8  }
 0x3c5   :  { %v581_v53 = vpop.trf.xlu0 }
 0x3c6   :  { %660 = vperm.xlu0 %718, %v581_v53   ;;  %619 = vperm.xlu1 %713, %v581_v53  }
 0x3c7   :  { %717 = vset.pattern.permute.xlu2 %v745_v44 }
 0x3c8   :  { %656 = vperm.xlu2 %717, %v580_v8  }
 0x3ce   :  { %716 = vset.pattern.permute.xlu1 %v745_v44 }
 0x3cf   :  { %652 = vperm.xlu1 %716, %v579_v50  }
 0x408   :  { %v649_v51 = vpop.permute.xlu2 %648 }
 0x409   :  { %v663_v3 = vmul.f32 %v649_v51, %v800_v0  ;;  %v664_v54 = vmul.f32 %v649_v51, %v805_v1 }
 0x40b   :  { %702 = vst [vmem:[%s1244_s9 + $0x40] sm:$0xff] %v663_v3 }
 0x40c   :  { %703 = vst [vmem:[%s1244_s9 + $0x48] sm:$0xff] %v664_v54 }
 0x411   :  { %v610_v21 = vpop.permute.xlu2 %609 }
 0x412   :  { %v624_v55 = vmul.f32 %v610_v21, %v856_v13  ;;  %v625_v7 = vmul.f32 %v610_v21, %v861_v14 }
 0x414   :  { %632 = vst [vmem:[%s1244_s9 + $0x10] sm:$0xff] %v624_v55 }
 0x415   :  { %633 = vst [vmem:[%s1244_s9 + $0x18] sm:$0xff] %v625_v7 }
 0x419   :  { %v615_v0 = vpop.permute.xlu2 %614 }
 0x41a   :  { %v626_v1 = vmul.f32 %v615_v0, %v810_v2  ;;  %v627_v15 = vmul.f32 %v615_v0, %v817_v4 }
 0x41c   :  { %634 = vst [vmem:[%s1244_s9 + $0x20] sm:$0xff] %v626_v1 }
 0x41d   :  { %635 = vst [vmem:[%s1244_s9 + $0x28] sm:$0xff] %v627_v15 }
 0x420   :  { %v605_v13 = vpop.permute.xlu1 %604 }
 0x421   :  { %v622_v14 = vmul.f32 %v605_v13, %v822_v5  ;;  %v623_v17 = vmul.f32 %v605_v13, %v827_v6 }
 0x422   :  { %v657_v24 = vpop.permute.xlu2 %656 }
 0x423   :  { %630 = vst [vmem:[%s1244_s9] sm:$0xff] %v622_v14  ;;  %v667_v2 = vmul.f32 %v657_v24, %v846_v11  ;;  %v668_v4 = vmul.f32 %v657_v24, %v851_v12 }
 0x424   :  { %631 = vst [vmem:[%s1244_s9 + $0x8] sm:$0xff] %v623_v17 }
 0x425   :  { %706 = vst [vmem:[%s1244_s9 + $0x60] sm:$0xff] %v667_v2 }
 0x426   :  { %707 = vst [vmem:[%s1244_s9 + $0x68] sm:$0xff] %v668_v4 }
 0x438   :  { %v661_v5 = vpop.permute.xlu0 %660  ;;  %v620_v6 = vpop.permute.xlu1 %619 }
 0x439   :  { %v669_v26 = vmul.f32 %v661_v5, %v872_v18  ;;  %v670_v11 = vmul.f32 %v661_v5, %v877_v19  ;;  %v628_v12 = vmul.f32 %v620_v6, %v886_v22  ;;  %v629_v27 = vmul.f32 %v620_v6, %v891_v23 }
 0x43b   :  { %708 = vst [vmem:[%s1244_s9 + $0x70] sm:$0xff] %v669_v26 }
 0x43c   :  { %709 = vst [vmem:[%s1244_s9 + $0x78] sm:$0xff] %v670_v11 }
 0x43d   :  { %636 = vst [vmem:[%s1244_s9 + $0x30] sm:$0xff] %v628_v12 }
 0x43e   :  { %637 = vst [vmem:[%s1244_s9 + $0x38] sm:$0xff] %v629_v27 }
 0x441   :  { %v653_v18 = vpop.permute.xlu1 %652 }
 0x442   :  { %v665_v19 = vmul.f32 %v653_v18, %v836_v9  ;;  %v666_v22 = vmul.f32 %v653_v18, %v841_v10 }
 0x444   :  { %704 = vst [vmem:[%s1244_s9 + $0x50] sm:$0xff] %v665_v19 }
 0x445   :  { %705 = vst [vmem:[%s1244_s9 + $0x58] sm:$0xff] %v666_v22 }

</bundles_post_ra>
